<compile_context>
chip_gen: v7x
topology: tpu7x:2x2x1
jax: 0.10.0
libtpu: 0.0.40
codegen_flags: <defaults>
</compile_context>

<pallas_src>
import jax
import jax.numpy as jnp
from jax.experimental import pallas as pl
from jax.experimental.pallas import tpu as pltpu


def critic_kernel(x_ref, w1_ref, b1_ref, w2_ref, b2_ref, o_ref):
    # x_ref : (4, TB)     batch tile, batch on lanes
    # w1_ref: (100, 4)    fc weight, PyTorch (out, in) layout used directly
    # b1_ref: (100, 1)    fc bias as a column (broadcast over lanes)
    # w2_ref: (100, 1)    v_head weight as a column
    # b2_ref: (1,) SMEM   v_head bias scalar
    # o_ref : (1, TB)     state values, batch on lanes
    # Layer 1 on the MXU: (100, 4) @ (4, TB) -> (100, TB), f32 accumulate.
    # TODO(synk): on v5e a K=4 unrolled VPU FMA path may beat this tiny MXU matmul.
    h = jnp.dot(w1_ref[...], x_ref[...], preferred_element_type=jnp.float32)
    h = jnp.maximum(h + b1_ref[...], 0.0)
    # Layer 2 (N=1): VPU multiply + sublane reduce instead of an MXU matmul.
    v = jnp.sum(h * w2_ref[...], axis=0, keepdims=True)          # (1, TB)
    o_ref[...] = (v + b2_ref[0]).astype(o_ref.dtype)


def critic_net_forward(x, w1, b1, w2, b2, *, tb=None):
    """PPO critic forward pass.

    Shapes follow PyTorch: x (B, 4) f32, w1 (100, 4), b1 (100,), w2 (1, 100),
    b2 (1,). Returns (B, 1) f32, identical to CriticNet.forward.
    """
    B = x.shape[0]
    if tb is None:
        # Lane-dense batch tile: multiple of 128, capped so the (100, TB) f32
        # hidden tile stays ~800 KiB (well under scoped VMEM on v5e/v6e/v7x).
        tb = max(128, min(2048, pl.cdiv(B, 128) * 128))
    b_pad = pl.cdiv(B, tb) * tb

    # Batch-on-lanes layout + zero-pad the batch tail (padded columns are
    # computed and then dropped; matmul/relu/sum are safe on zeros).
    x_t = jnp.zeros((4, b_pad), jnp.float32).at[:, :B].set(x.astype(jnp.float32).T)
    b1_col = b1.reshape(100, 1).astype(jnp.float32)
    w2_col = w2.reshape(100, 1).astype(jnp.float32)
    b2_vec = b2.reshape(1).astype(jnp.float32)

    out_t = pl.pallas_call(
        critic_kernel,
        out_shape=jax.ShapeDtypeStruct((1, b_pad), jnp.float32),
        grid=(b_pad // tb,),
        in_specs=[
            pl.BlockSpec((4, tb), lambda i: (0, i)),             # x tile (streamed)
            pl.BlockSpec((100, 4), lambda i: (0, 0)),            # W1 (VMEM-resident)
            pl.BlockSpec((100, 1), lambda i: (0, 0)),            # b1 (VMEM-resident)
            pl.BlockSpec((100, 1), lambda i: (0, 0)),            # W2 (VMEM-resident)
            pl.BlockSpec(memory_space=pltpu.MemorySpace.SMEM),   # b2 scalar in SMEM
        ],
        out_specs=pl.BlockSpec((1, tb), lambda i: (0, i)),       # lane-dense output
        compiler_params=pltpu.CompilerParams(
            dimension_semantics=("parallel",),                   # megacore on v7x
        ),
    )(x_t, w1.astype(jnp.float32), b1_col, w2_col, b2_vec)

    return out_t[0, :B].reshape(B, 1)


def init_params(key):
    """PyTorch nn.Linear default init (uniform +-1/sqrt(fan_in)), PyTorch layouts."""
    k1, k2, k3, k4 = jax.random.split(key, 4)
    bound1 = 1.0 / jnp.sqrt(4.0)
    bound2 = 1.0 / jnp.sqrt(100.0)
    w1 = jax.random.uniform(k1, (100, 4), jnp.float32, -bound1, bound1)
    b1 = jax.random.uniform(k2, (100,), jnp.float32, -bound1, bound1)
    w2 = jax.random.uniform(k3, (1, 100), jnp.float32, -bound2, bound2)
    b2 = jax.random.uniform(k4, (1,), jnp.float32, -bound2, bound2)
    return w1, b1, w2, b2


if __name__ == "__main__":
    key = jax.random.PRNGKey(0)
    k_x, k_x2, k_p = jax.random.split(key, 3)
    w1, b1, w2, b2 = init_params(k_p)

    def ref_fn(xx):
        return jnp.maximum(xx @ w1.T + b1, 0.0) @ w2.T + b2

    # Small batch (single grid step, matches the module's implied shapes).
    B = 8
    x = jax.random.normal(k_x, (B, 4), jnp.float32)
    out = jax.block_until_ready(critic_net_forward(x, w1, b1, w2, b2))
    assert out.shape == (B, 1)
    assert jnp.allclose(out, ref_fn(x), atol=1e-5, rtol=1e-5)

    # Larger batch that is not a tile multiple: exercises multiple grid steps
    # and the zero-padded tail tile.
    B2 = 300
    x2 = jax.random.normal(k_x2, (B2, 4), jnp.float32)
    out2 = jax.block_until_ready(critic_net_forward(x2, w1, b1, w2, b2, tb=128))
    assert out2.shape == (B2, 1)
    assert jnp.allclose(out2, ref_fn(x2), atol=1e-5, rtol=1e-5)

    print("KERNEL_OK")
</pallas_src>

<mosaic_0001>
module attributes {stable_mosaic.version = 11 : i64} {
  func.func @critic_kernel(%arg0: i32, %arg1: memref<4x128xf32, #tpu.memory_space<vmem>>, %arg2: memref<100x4xf32, #tpu.memory_space<vmem>>, %arg3: memref<100x1xf32, #tpu.memory_space<vmem>>, %arg4: memref<100x1xf32, #tpu.memory_space<vmem>>, %arg5: memref<1xf32, #tpu.memory_space<smem>>, %arg6: memref<1x128xf32, #tpu.memory_space<vmem>>) attributes {dimension_semantics = [#tpu.dimension_semantics<parallel>], iteration_bounds = array<i64: 1>, scalar_prefetch = 0 : i64, scratch_operands = 0 : i64, tpu.core_type = #tpu.core_type<tc>, window_params = [{transform_indices = @transform_0, window_bounds = array<i64: 4, 128>}, {pipeline_mode = #tpu.pipeline_mode<synchronous>, transform_indices = @transform_1, window_bounds = array<i64: 100, 4>}, {pipeline_mode = #tpu.pipeline_mode<synchronous>, transform_indices = @transform_2, window_bounds = array<i64: 100, 1>}, {pipeline_mode = #tpu.pipeline_mode<synchronous>, transform_indices = @transform_3, window_bounds = array<i64: 100, 1>}, {transform_indices = @transform_4, window_bounds = array<i64: 1>}, {transform_indices = @transform_5, window_bounds = array<i64: 1, 128>}]} {
    %c0 = arith.constant 0 : index
    %c0_0 = arith.constant 0 : index
    %0 = vector.load %arg2[%c0, %c0_0] : memref<100x4xf32, #tpu.memory_space<vmem>>, vector<100x4xf32>
    %c0_1 = arith.constant 0 : index
    %c0_2 = arith.constant 0 : index
    %1 = vector.load %arg1[%c0_1, %c0_2] : memref<4x128xf32, #tpu.memory_space<vmem>>, vector<4x128xf32>
    %cst = arith.constant dense<0.000000e+00> : vector<100x128xf32>
    %2 = tpu.matmul %0, %1, %cst {dimension_numbers = #tpu.dot_dimension_numbers<[1], [0], [0], [1], [0, 0, 1, 1], [], []>} : vector<100x4xf32>, vector<4x128xf32>, vector<100x128xf32> -> vector<100x128xf32>
    %c0_3 = arith.constant 0 : index
    %c0_4 = arith.constant 0 : index
    %3 = vector.load %arg3[%c0_3, %c0_4] : memref<100x1xf32, #tpu.memory_space<vmem>>, vector<100x1xf32>
    %4 = vector.broadcast %3 : vector<100x1xf32> to vector<100x128xf32>
    %5 = arith.addf %2, %4 : vector<100x128xf32>
    %cst_5 = arith.constant 0.000000e+00 : f32
    %6 = vector.broadcast %cst_5 : f32 to vector<100x128xf32>
    %7 = arith.maximumf %5, %6 : vector<100x128xf32>
    %c0_6 = arith.constant 0 : index
    %c0_7 = arith.constant 0 : index
    %8 = vector.load %arg4[%c0_6, %c0_7] : memref<100x1xf32, #tpu.memory_space<vmem>>, vector<100x1xf32>
    %9 = vector.broadcast %8 : vector<100x1xf32> to vector<100x128xf32>
    %10 = arith.mulf %7, %9 : vector<100x128xf32>
    %cst_8 = arith.constant dense<0.000000e+00> : vector<128xf32>
    %11 = vector.multi_reduction <add>, %10, %cst_8 [0] : vector<100x128xf32> to vector<128xf32>
    %12 = vector.shape_cast %11 : vector<128xf32> to vector<1x128xf32>
    %c0_9 = arith.constant 0 : index
    %13 = memref.load %arg5[%c0_9] : memref<1xf32, #tpu.memory_space<smem>>
    %14 = vector.broadcast %13 : f32 to vector<1x128xf32>
    %15 = arith.addf %12, %14 : vector<1x128xf32>
    %c0_10 = arith.constant 0 : index
    %c0_11 = arith.constant 0 : index
    %16 = vector.load %arg6[%c0_10, %c0_11] : memref<1x128xf32, #tpu.memory_space<vmem>>, vector<1x128xf32>
    tpu.vector_store %arg6[%c0_10, %c0_11], %15 {strides = array<i32>} : memref<1x128xf32, #tpu.memory_space<vmem>>, vector<1x128xf32>,
    return
  }
  func.func @transform_0(%arg0: i32) -> (i32, i32) {
    %c0_i32 = arith.constant 0 : i32
    %c0_i32_0 = arith.constant 0 : i32
    return %c0_i32, %arg0 : i32, i32
  }
  func.func @transform_1(%arg0: i32) -> (i32, i32) {
    %c0_i32 = arith.constant 0 : i32
    %c0_i32_0 = arith.constant 0 : i32
    %c0_i32_1 = arith.constant 0 : i32
    return %c0_i32, %c0_i32_0 : i32, i32
  }
  func.func @transform_2(%arg0: i32) -> (i32, i32) {
    %c0_i32 = arith.constant 0 : i32
    %c0_i32_0 = arith.constant 0 : i32
    %c0_i32_1 = arith.constant 0 : i32
    return %c0_i32, %c0_i32_0 : i32, i32
  }
  func.func @transform_3(%arg0: i32) -> (i32, i32) {
    %c0_i32 = arith.constant 0 : i32
    %c0_i32_0 = arith.constant 0 : i32
    %c0_i32_1 = arith.constant 0 : i32
    return %c0_i32, %c0_i32_0 : i32, i32
  }
  func.func @transform_4(%arg0: i32) -> i32 {
    %c0_i32 = arith.constant 0 : i32
    %c0_i32_0 = arith.constant 0 : i32
    return %c0_i32 : i32
  }
  func.func @transform_5(%arg0: i32) -> (i32, i32) {
    %c0_i32 = arith.constant 0 : i32
    %c0_i32_0 = arith.constant 0 : i32
    return %c0_i32, %arg0 : i32, i32
  }
}

</mosaic_0001>

<bundles_post_ra>
// kernel: tpu_custom_call.1
= control target key start
LH: loop header
LB: loop body
LE: loop exit
PB: predicated region body
PF: predicated region fallthrough
CT: control target
= control target key end

     0   :  { %vm154_vm0 = vcmask 1043456   ;;  %v530_v1 = vmov 0.0   ;;  %vm114_vm1 = vcmask 31744   ;;  %vm531_vm2 = vmmov 0   ;;  %s743_s0 = inlined_call_operand.vmem [shape: f32[4,128], index: 0, kind: input, shape index: {}]   ;;  %s744_s1 = inlined_call_operand.vmem [shape: f32[100,4], index: 1, kind: input, shape index: {}]   ;;  %s745_s2 = inlined_call_operand.vmem [shape: f32[100,1], index: 2, kind: input, shape index: {}]   ;;  %s746_s3 = inlined_call_operand.vmem [shape: f32[100,1], index: 3, kind: input, shape index: {}]   ;;  %s747_s4 = inlined_call_operand.<no memory space> [shape: f32[1], index: 4, kind: input, shape index: {}]   ;;  %s748_s5 = inlined_call_operand.hbm [shape: f32[1,128], index: 5, kind: output, shape index: {}]  }
   0x1   :  { %v35_v0 = vld [vmem:[%s743_s0] sm:$0xf]  ;;  %457 = vmatprep.subr.mxu0 %v530_v1  ;;  %498 = vmatprep.subr.mxu1 %v530_v1  ;;  %v29_v3 = vld [vmem:[%s744_s1 + $0x38] sm:$0xff]  ;;  %v23_v4 = vld [vmem:[%s744_s1 + $0x8] sm:$0xff]  ;;  %v532_v8 = vmov 0  }
   0x2   :  { %v22_v2 = vld [vmem:[%s744_s1] sm:$0xff]  ;;  %458 = vmatpush3.msk.msra.mxu0 %vm154_vm0, %v35_v0  ;;  %499 = vmatpush3.msk.msra.mxu1 %vm154_vm0, %v35_v0  ;;  %v38_v7 = vld [vmem:[%s745_s2 + $0x10] sm:$0xff]  ;;  %v37_v9 = vld [vmem:[%s745_s2 + $0x8] sm:$0xff] }
   0x3   :  { %459 = vmatprep.mubr.msk.f32.mxu0 %vm531_vm2, %v530_v1  ;;  %480 = vmatprep.mubr.msk.f32.mxu1 %vm531_vm2, %v530_v1  ;;  %v30_v5 = vld [vmem:[%s744_s1 + $0x40] sm:$0xff]  ;;  %v39_v10 = vld [vmem:[%s745_s2 + $0x18] sm:$0xff]  ;;  %v24_v11 = vld [vmem:[%s744_s1 + $0x10] sm:$0xff] }
   0x4   :  { %460 = vmatmul.mubr.msk.f32.vlgmr.msra.gmra.mrb[0].mxu0 %vm114_vm1, %v22_v2  ;;  %481 = vmatmul.mubr.msk.f32.vlgmr.msra.gmra.mrb[0].mxu1 %vm114_vm1, %v29_v3  ;;  %v36_v6 = vld [vmem:[%s745_s2] sm:$0xff]  ;;  %v31_v12 = vld [vmem:[%s744_s1 + $0x48] sm:$0xff]  ;;  %v25_v15 = vld [vmem:[%s744_s1 + $0x18] sm:$0xff] }
   0x5   :  { %462 = vmatprep.mubr.msk.f32.mxu0 %vm531_vm2, %v530_v1  ;;  %483 = vmatprep.mubr.msk.f32.mxu1 %vm531_vm2, %v530_v1  ;;  %v301_v13 = vld [vmem:[%s746_s3] sm:$0xff]  ;;  %v302_v14 = vld [vmem:[%s746_s3 + $0x8] sm:$0xff]  ;;  %v32_v16 = vld [vmem:[%s744_s1 + $0x50] sm:$0xff] }
   0x6   :  { %504 = vset.pattern.permute.xlu0 %v532_v8  ;;  %505 = vset.pattern.permute.xlu1 %v532_v8 }
   0x7   :  { %51 = vperm.xlu0 %504, %v36_v6   ;;  %61 = vperm.xlu1 %505, %v38_v7  }
   0x8   :  { %463 = vmatmul.mubr.msk.f32.gmra.mrb[2].mxu0 %vm114_vm1, %v23_v4  ;;  %484 = vmatmul.mubr.msk.f32.gmra.mrb[2].mxu1 %vm114_vm1, %v30_v5 }
   0x9   :  { %465 = vmatprep.mubr.msk.f32.mxu0 %vm531_vm2, %v530_v1  ;;  %486 = vmatprep.mubr.msk.f32.mxu1 %vm531_vm2, %v530_v1 }
   0xb   :  { %56 = vperm.xlu0 %504, %v37_v9   ;;  %66 = vperm.xlu1 %505, %v39_v10  }
   0xc   :  { %466 = vmatmul.mubr.msk.f32.gmra.mrb[4].mxu0 %vm114_vm1, %v24_v11  ;;  %487 = vmatmul.mubr.msk.f32.gmra.mrb[4].mxu1 %vm114_vm1, %v31_v12 }
   0xd   :  { %468 = vmatprep.mubr.msk.f32.mxu0 %vm531_vm2, %v530_v1  ;;  %489 = vmatprep.mubr.msk.f32.mxu1 %vm531_vm2, %v530_v1 }
   0xe   :  { %11 = vsyncpa [#allocation4], 0  ;;  %v40_v17 = vld [vmem:[%s745_s2 + $0x20] sm:$0xff]  ;;  %v303_v18 = vld [vmem:[%s746_s3 + $0x10] sm:$0xff]  ;;  %s533_s19 = smov [#allocation3]  }
   0xf   :  { %316 = vperm.xlu0 %504, %v301_v13   ;;  %321 = vperm.xlu1 %505, %v302_v14   ;;  %v26_v19 = vld [vmem:[%s744_s1 + $0x20] sm:$0xff]  ;;  %v33_v20 = vld [vmem:[%s744_s1 + $0x58] sm:$0xff]  ;;  %v41_v21 = vld [vmem:[%s745_s2 + $0x28] sm:$0xff]  ;;  %s421_s20 = sshll.u32 %s533_s19, 4  ;;  %s422_s20 = int_to_ptr.vmem [resolvable:$true] %s421_s20 }
  0x10   :  { %469 = vmatmul.mubr.msk.f32.gmra.mrb[6].mxu0 %vm114_vm1, %v25_v15  ;;  %490 = vmatmul.mubr.msk.f32.gmra.mrb[6].mxu1 %vm114_vm1, %v32_v16  ;;  %v304_v22 = vld [vmem:[%s746_s3 + $0x18] sm:$0xff]  ;;  %v27_v23 = vld [vmem:[%s744_s1 + $0x28] sm:$0xff]  ;;  %v34_v24 = vld [vmem:[%s744_s1 + $0x60] sm:$0xf]  ;;  %s506_s21 = scalar_lea.vmem %s422_s20, 16  ;;  %s510_s22 = scalar_lea.vmem %s422_s20, 32 }
  0x11   :  { %471 = vmatprep.mubr.msk.f32.mxu0 %vm531_vm2, %v530_v1  ;;  %492 = vmatprep.mubr.msk.f32.mxu1 %vm531_vm2, %v530_v1  ;;  %v42_v25 = vld [vmem:[%s745_s2 + $0x30] sm:$0xff]  ;;  %v305_v26 = vld [vmem:[%s746_s3 + $0x20] sm:$0xff]  ;;  %v43_v28 = vld [vmem:[%s745_s2 + $0x38] sm:$0xff]  ;;  %p507_p0 = scmp.ne.s32.totalorder %s422_s20, %s506_s21  ;;  %p511_p1 = scmp.lt.s32.totalorder %s422_s20, %s422_s20 }
  0x12   :  { %v28_v27 = vld [vmem:[%s744_s1 + $0x30] sm:$0xff]  ;;  %v306_v29 = vld [vmem:[%s746_s3 + $0x28] sm:$0xff]  ;;  %v44_v30 = vld [vmem:[%s745_s2 + $0x40] sm:$0xff]  ;;  %p512_p2 = scmp.lt.s32.totalorder %s510_s22, %s506_s21 }
  0x13   :  { %71 = vperm.xlu0 %504, %v40_v17   ;;  %326 = vperm.xlu1 %505, %v303_v18   ;;  %v307_v31 = vld [vmem:[%s746_s3 + $0x30] sm:$0xff]  ;;  %v45_v32 = vld [vmem:[%s745_s2 + $0x48] sm:$0xff]  ;;  %v308_v33 = vld [vmem:[%s746_s3 + $0x38] sm:$0xff] }
  0x14   :  { %472 = vmatmul.mubr.msk.f32.gmra.mrb[8].mxu0 %vm114_vm1, %v26_v19  ;;  %493 = vmatmul.mubr.msk.f32.gmra.mrb[8].mxu1 %vm114_vm1, %v33_v20  ;;  %v46_v34 = vld [vmem:[%s745_s2 + $0x50] sm:$0xff]  ;;  %v309_v35 = vld [vmem:[%s746_s3 + $0x40] sm:$0xff]  ;;  %v47_v36 = vld [vmem:[%s745_s2 + $0x58] sm:$0xff]  ;;  %p513_p3 = por %p512_p2, %p511_p1 }
  0x15   :  { %474 = vmatprep.mubr.msk.f32.mxu0 %vm531_vm2, %v530_v1  ;;  %495 = vmatprep.mubr.msk.f32.mxu1 %vm531_vm2, %v530_v1  ;;  %v310_v37 = vld [vmem:[%s746_s3 + $0x48] sm:$0xff]  ;;  %v48_v38 = vld [vmem:[%s745_s2 + $0x60] sm:$0xf]  ;;  %v311_v39 = vld [vmem:[%s746_s3 + $0x50] sm:$0xff] }
  0x16   :  { %v312_v40 = vld [vmem:[%s746_s3 + $0x58] sm:$0xff]  ;;  %v313_v41 = vld [vmem:[%s746_s3 + $0x60] sm:$0xf]  ;;  %p514_p4 = pnand %p513_p3, %p507_p0 }
  0x17   :  { %76 = vperm.xlu0 %504, %v41_v21   ;;  %331 = vperm.xlu1 %505, %v304_v22  }
  0x18   :  { %475 = vmatmul.mubr.msk.f32.gmra.mrb[10].mxu0 %vm114_vm1, %v27_v23  ;;  %496 = vmatmul.mubr.msk.f32.gmra.mrb[10].mxu1 %vm114_vm1, %v34_v24 }
  0x19   :  { %477 = vmatprep.mubr.msk.f32.mxu0 %vm531_vm2, %v530_v1 }
  0x1b   :  { %81 = vperm.xlu0 %504, %v42_v25   ;;  %336 = vperm.xlu1 %505, %v305_v26  }
  0x1c   :  { %478 = vmatmul.mubr.msk.f32.gmra.mrb[12].mxu0 %vm114_vm1, %v28_v27 }
  0x1f   :  { %86 = vperm.xlu0 %504, %v43_v28   ;;  %341 = vperm.xlu1 %505, %v306_v29  }
  0x23   :  { %91 = vperm.xlu0 %504, %v44_v30   ;;  %346 = vperm.xlu1 %505, %v307_v31  }
  0x27   :  { %96 = vperm.xlu0 %504, %v45_v32   ;;  %351 = vperm.xlu1 %505, %v308_v33  }
  0x2b   :  { %101 = vperm.xlu0 %504, %v46_v34   ;;  %356 = vperm.xlu1 %505, %v309_v35  }
  0x2f   :  { %106 = vperm.xlu0 %504, %v47_v36   ;;  %361 = vperm.xlu1 %505, %v310_v37  }
  0x33   :  { %111 = vperm.xlu0 %504, %v48_v38   ;;  %366 = vperm.xlu1 %505, %v311_v39  }
  0x37   :  { %371 = vperm.xlu0 %504, %v312_v40   ;;  %376 = vperm.xlu1 %505, %v313_v41  }
  0x86   :  { %v52_v42 = vpop.permute.xlu0 %51  ;;  %v62_v43 = vpop.permute.xlu1 %61 }
  0x8a   :  { %v57_v44 = vpop.permute.xlu0 %56  ;;  %v67_v45 = vpop.permute.xlu1 %66 }
  0x8e   :  { %v317_v46 = vpop.permute.xlu0 %316  ;;  %v322_v47 = vpop.permute.xlu1 %321 }
  0x92   :  { %v72_v48 = vpop.permute.xlu0 %71  ;;  %v327_v49 = vpop.permute.xlu1 %326 }
  0x96   :  { %v77_v50 = vpop.permute.xlu0 %76  ;;  %v332_v51 = vpop.permute.xlu1 %331 }
  0x9a   :  { %v82_v52 = vpop.permute.xlu0 %81  ;;  %v337_v53 = vpop.permute.xlu1 %336 }
  0x9e   :  { %v87_v54 = vpop.permute.xlu0 %86  ;;  %v342_v55 = vpop.permute.xlu1 %341 }
  0xa2   :  { %v92_v56 = vpop.permute.xlu0 %91  ;;  %v347_v62 = vpop.permute.xlu1 %346 }
  0xa6   :  { %v97_v5 = vpop.permute.xlu0 %96  ;;  %v352_v14 = vpop.permute.xlu1 %351 }
  0xaa   :  { %v102_v23 = vpop.permute.xlu0 %101  ;;  %v357_v32 = vpop.permute.xlu1 %356 }
  0xae   :  { %v107_v41 = vpop.permute.xlu0 %106 }
  0xd7   :  { %v224_v57 = vpop.f32.mrb[0].mxu0  ;;  %v259_v58 = vpop.f32.mrb[0].mxu1 }
  0xd8   :  { %v225_v59 = vadd.f32 %v224_v57, %v52_v42  ;;  %v461_v60 = vpop.f32.mrb[1].mxu0  ;;  %v482_v61 = vpop.f32.mrb[1].mxu1  ;;  %v260_v42 = vadd.f32 %v259_v58, %v87_v54 }
  0xda   :  { %v288_v1 = vmax.f32 %v225_v59, 0.0  ;;  %v295_v57 = vmax.f32 %v260_v42, 0.0 }
  0xdb   :  { %v229_v63 = vpop.f32.mrb[2].mxu0  ;;  %v264_v0 = vpop.f32.mrb[2].mxu1 }
  0xdc   :  { %v230_v2 = vadd.f32 %v229_v63, %v57_v44  ;;  %v464_v3 = vpop.f32.mrb[3].mxu0  ;;  %v485_v4 = vpop.f32.mrb[3].mxu1  ;;  %v379_v9 = vmul.f32 %v317_v46, %v288_v1 }
  0xdd   :  { %v362_v46 = vpop.permute.xlu1 %361  ;;  %v112_v63 = vpop.permute.xlu0 %111  ;;  %v386_v4 = vmul.f32 %v352_v14, %v295_v57 }
  0xde   :  { %v289_v6 = vmax.f32 %v230_v2, 0.0 }
  0xdf   :  { %v234_v7 = vpop.f32.mrb[4].mxu0  ;;  %v269_v8 = vpop.f32.mrb[4].mxu1 }
  0xe0   :  { %v380_v10 = vmul.f32 %v322_v47, %v289_v6  ;;  %v235_v11 = vadd.f32 %v234_v7, %v62_v43  ;;  %v467_v12 = vpop.f32.mrb[5].mxu0  ;;  %v488_v13 = vpop.f32.mrb[5].mxu1  ;;  %v265_v47 = vadd.f32 %v264_v0, %v92_v56  ;;  %v270_v59 = vadd.f32 %v269_v8, %v97_v5 }
  0xe1   :  { %v367_v3 = vpop.permute.xlu1 %366  ;;  %v372_v12 = vpop.permute.xlu0 %371 }
  0xe2   :  { %v392_v15 = vadd.f32 %v380_v10, %v379_v9  ;;  %v290_v16 = vmax.f32 %v235_v11, 0.0  ;;  %v296_v1 = vmax.f32 %v265_v47, 0.0  ;;  %v297_v54 = vmax.f32 %v270_v59, 0.0 }
  0xe3   :  { %v239_v17 = vpop.f32.mrb[6].mxu0  ;;  %v274_v18 = vpop.f32.mrb[6].mxu1 }
  0xe4   :  { %v381_v19 = vmul.f32 %v327_v49, %v290_v16  ;;  %v240_v20 = vadd.f32 %v239_v17, %v67_v45  ;;  %v470_v21 = vpop.f32.mrb[7].mxu0  ;;  %v491_v22 = vpop.f32.mrb[7].mxu1  ;;  %v387_v7 = vmul.f32 %v357_v32, %v296_v1 }
  0xe5   :  { %v377_v5 = vpop.permute.xlu1 %376 }
  0xe6   :  { %v393_v24 = vadd.f32 %v392_v15, %v381_v19  ;;  %v291_v25 = vmax.f32 %v240_v20, 0.0 }
  0xe7   :  { %v244_v26 = vpop.f32.mrb[8].mxu0  ;;  %v279_v27 = vpop.f32.mrb[8].mxu1 }
  0xe8   :  { %v382_v28 = vmul.f32 %v332_v51, %v291_v25  ;;  %v245_v29 = vadd.f32 %v244_v26, %v72_v48  ;;  %v473_v30 = vpop.f32.mrb[9].mxu0  ;;  %v494_v31 = vpop.f32.mrb[9].mxu1  ;;  %v280_v58 = vadd.f32 %v279_v27, %v107_v41 }
  0xea   :  { %v394_v33 = vadd.f32 %v393_v24, %v382_v28  ;;  %v292_v34 = vmax.f32 %v245_v29, 0.0  ;;  %v299_v0 = vmax.f32 %v280_v58, 0.0 }
  0xeb   :  { %v249_v35 = vpop.f32.mrb[10].mxu0  ;;  %v284_v36 = vpop.f32.mrb[10].mxu1 }
  0xec   :  { %v383_v37 = vmul.f32 %v337_v53, %v292_v34  ;;  %v250_v38 = vadd.f32 %v249_v35, %v77_v50  ;;  %v476_v39 = vpop.f32.mrb[11].mxu0  ;;  %v497_v40 = vpop.f32.mrb[11].mxu1  ;;  %v275_v53 = vadd.f32 %v274_v18, %v102_v23  ;;  %v285_v2 = vadd.f32 %v284_v36, %v112_v63 }
  0xed   :  { %v390_v15 = vmul.f32 %v372_v12, %v299_v0  ;;  %v412_v23 = vstv %s747_s4 }
  0xee   :  { %v395_v43 = vadd.f32 %v394_v33, %v383_v37  ;;  %v293_v44 = vmax.f32 %v250_v38, 0.0  ;;  %v298_v9 = vmax.f32 %v275_v53, 0.0 }
  0xef   :  { %v254_v45 = vpop.f32.mrb[12].mxu0 }
  0xf0   :  { %v384_v49 = vmul.f32 %v342_v55, %v293_v44  ;;  %v255_v48 = vadd.f32 %v254_v45, %v82_v52  ;;  %v479_v51 = vpop.f32.mrb[13].mxu0  ;;  %v300_v55 = vmax.f32 %v285_v2, 0.0  ;;  %v388_v52 = vmul.f32 %v362_v46, %v297_v54 }
  0xf1   :  { %v389_v8 = vmul.f32 %v367_v3, %v298_v9 }
  0xf2   :  { %v396_v60 = vadd.f32 %v395_v43, %v384_v49  ;;  %v294_v61 = vmax.f32 %v255_v48, 0.0  ;;  %v391_v13 = vmul.f32 %v377_v5, %v300_v55 }
  0xf4   :  { %v385_v50 = vmul.f32 %v347_v62, %v294_v61  ;;  %v403_v14 = vsel %vm154_vm0, %v391_v13, 0.0 }
  0xf6   :  { %v397_v6 = vadd.f32 %v396_v60, %v385_v50 }
  0xf8   :  { %v398_v56 = vadd.f32 %v397_v6, %v386_v4 }
  0xfa   :  { %v399_v10 = vadd.f32 %v398_v56, %v387_v7 }
  0xfc   :  { %v400_v11 = vadd.f32 %v399_v10, %v388_v52 }
  0xfe   :  { %v401_v62 = vadd.f32 %v400_v11, %v389_v8 }
 0x100   :  { %v402_v16 = vadd.f32 %v401_v62, %v390_v15 }
 0x102   :  { %v404_v17 = vadd.f32 %v403_v14, %v402_v16 }
 0x104   :  { %v405_v18 = vrot.slane %v404_v17, 4 }
 0x106   :  { %v406_v19 = vadd.f32 %v405_v18, %v404_v17 }
 0x108   :  { %v407_v20 = vrot.slane %v406_v19, 2 }
 0x10a   :  { %v408_v21 = vadd.f32 %v407_v20, %v406_v19 }
 0x10c   :  { %v409_v22 = vrot.slane %v408_v21, 1 }
 0x10e   :  { %v410_v24 = vadd.f32 %v409_v22, %v408_v21 }
 0x110   :  { %v413_v25 = vadd.f32 %v412_v23, %v410_v24 }
 0x112   :  { %414 = vst [vmem:[#allocation3] sm:$0x1] %v413_v25 }
 0x113   :  { %517 = shalt.err (!%p514_p4)
}
 0x114   :  { %s518_s1 = scalar_lea.hbm %s748_s5, 16 }
 0x115   :  { %p519_p5 = scmp.ne.s32.totalorder %s748_s5, %s518_s1  ;;  %p522_p6 = scmp.lt.u32.totalorder %s518_s1, %s748_s5 }
 0x117   :  { %p524_p7 = pnand %p522_p6, %p519_p5 }
 0x119   :  { %527 = shalt.err (!%p524_p7)
}
 0x11a   :  { %424 = dma.vmem_to_hbm [thread:$0]  %s422_s20, 16, %s748_s5, [#allocation4]  }
 0x11b   :  { %528 = dma.done.wait [#allocation4], 16  }
 0x11c   :  { %529 = vsyncadd [#allocation4], 4294967280 }
 0x11d   :  { %428 = vsyncpa [#allocation4], 1 }

</bundles_post_ra>
